<compile_context>
chip_gen: v6e
topology: v6e:2x2x1
jax: 0.10.0
libtpu: 0.0.40
codegen_flags: <defaults>
</compile_context>

<pallas_src>
import jax
import jax.numpy as jnp
from jax.experimental import pallas as pl
from jax.experimental.pallas import tpu as pltpu


def _add_pos_kernel(x_ref, pos_ref, o_ref):
    # Squeezed-batch path: x/pos/o are identical (tR, C) tiles -> plain vadd.
    # Batch-packed path:   x/o are (bT, tR, C), pos is (tR, C) -> broadcast over
    # the leading bT axis (VPU-cheap, invisible in a mem-bound kernel).
    x = x_ref[...]
    p = pos_ref[...]
    if x.ndim == p.ndim + 1:
        p = p[None]
    o_ref[...] = x + p


def _lane_dense_factorization(L: int, D: int):
    """Factor L*D into (R, C) with C a multiple of 128 when possible."""
    M = L * D
    if D % 128 == 0:
        return L, D
    if M % 128 == 0:
        C = 128
        # Grow lane width while keeping >= 8 rows so sublanes stay dense too.
        while M % (C * 2) == 0 and (M // (C * 2)) >= 8 and C < 2048:
            C *= 2
        return M // C, C
    # Fallback: L*D not a multiple of 128; keep native layout (masked stores).
    return L, D


def _target_tile_bytes() -> int:
    """Per-chip tile budget: footprint is ~6x tile (double-buffered x/out/pos)."""
    try:
        kind = jax.devices()[0].device_kind.lower()
    except Exception:
        return 2 << 20
    # v5e has only a 16 MiB default scoped VMEM -> keep ~2 MiB tiles (12 MiB).
    if "v5 lite" in kind or "v5e" in kind or "v5litepod" in kind:
        return 2 << 20
    # v6e / v7x: 32 MiB scoped default -> ~4 MiB tiles (24 MiB) amortize the
    # ~0.35us per-grid-step overhead at 1.4-3.2 TB/s HBM bandwidth.
    if "v6" in kind or "v7" in kind:
        return 4 << 20
    return 2 << 20  # conservative default (v4 / unknown / interpret)


def _row_tile(R: int, C: int, itemsize: int, target_bytes: int, sub: int) -> int:
    """Row tile tR: full R, or a multiple-of-`sub` tile of ~target_bytes."""
    bytes_per_row = max(1, C * itemsize)
    max_rows = max(sub, target_bytes // bytes_per_row)
    if R <= max_rows:
        return R
    max_rows = max(sub, (max_rows // sub) * sub)
    # Largest multiple-of-`sub` divisor of R that fits the budget.
    best = 0
    for t in range(sub, max_rows + 1, sub):
        if R % t == 0:
            best = t
    if best >= max_rows // 2:
        return best  # dividing tile is big enough -> no ragged edge
    # Prefer a large ragged tile (Pallas masks the edge block) over a tiny
    # dividing one: per-grid-step overhead dominates small tiles.
    return max_rows


def _choose_tiling(B: int, R: int, C: int, itemsize: int, target_bytes: int):
    """Pick (bT, tR): batch elements per block and (R, C)-rows per block."""
    # Native sublane tile per dtype: f32 -> 8, bf16 -> 16, int8/fp8 -> 32.
    sub = max(8, 32 // max(1, itemsize))
    slab_bytes = R * C * itemsize  # one batch element's (R, C) slab

    if B > 1 and 2 * slab_bytes <= target_bytes:
        # Small per-batch slab: pack several batch elements per grid step so a
        # step moves ~target_bytes instead of a few KiB.
        bT = min(B, max(1, target_bytes // max(1, slab_bytes)))
        # Keep at least two grid steps so v7x's second TensorCore has work.
        bT = min(bT, max(1, -(-B // 2)))
        return bT, R

    tR = _row_tile(R, C, itemsize, target_bytes, sub)
    # If the whole problem collapses to a single grid step (B == 1, tR == R),
    # split rows so v7x's second TensorCore is not idle.
    if B == 1 and tR >= R and R >= 2 * sub:
        half = -(-R // 2)
        tR = min(R, -(-half // sub) * sub)
    return 1, tR


@jax.jit
def _learned_pos_encoding_pallas(x_flat, pos_table, offset):
    """x_flat: (B, L, D); pos_table: (S, D); offset: traced int32 scalar."""
    B, L, D = x_flat.shape

    # Slice the learned table at the (runtime) offset; glue, not the hot path.
    # TODO(synk): fuse this slice + cast into the kernel via
    # PrefetchScalarGridSpec(num_scalar_prefetch=1) + a manual pos-row DMA;
    # deferred because non-tile-aligned offsets clash with ragged row tiles.
    pos = jax.lax.dynamic_slice(pos_table, (offset, 0), (L, D))
    pos = pos.astype(x_flat.dtype)

    # Lane-dense re-factorization of the trailing (L, D) slab.
    itemsize = jnp.dtype(x_flat.dtype).itemsize
    target_bytes = _target_tile_bytes()
    R, C = _lane_dense_factorization(L, D)
    bT, tR = _choose_tiling(B, R, C, itemsize, target_bytes)

    x2 = x_flat.reshape(B, R, C)
    pos2 = pos.reshape(R, C)

    n_r = pl.cdiv(R, tR)
    n_b = pl.cdiv(B, bT)

    if bT == 1:
        # Squeezed batch block: kernel body is a plain 2-D vld/vadd/vst.
        x_spec = pl.BlockSpec((None, tR, C), lambda r, b: (b, r, 0))
        o_spec = pl.BlockSpec((None, tR, C), lambda r, b: (b, r, 0))
    else:
        # Batch-packed block: several batch elements per step; pos broadcasts
        # over the leading bT axis inside the kernel.
        x_spec = pl.BlockSpec((bT, tR, C), lambda r, b: (b, r, 0))
        o_spec = pl.BlockSpec((bT, tR, C), lambda r, b: (b, r, 0))
    # Shared over the inner batch axis -> stays VMEM-resident across it.
    # TODO(synk): pipeline_mode=pl.Buffered(1) for pos to free its dead second buffer.
    pos_spec = pl.BlockSpec((tR, C), lambda r, b: (r, 0))

    out = pl.pallas_call(
        _add_pos_kernel,
        out_shape=jax.ShapeDtypeStruct((B, R, C), x_flat.dtype),
        grid_spec=pltpu.PrefetchScalarGridSpec(
            num_scalar_prefetch=0,
            # Batch axis innermost so the pos block index is constant across it.
            grid=(n_r, n_b),
            in_specs=[x_spec, pos_spec],
            out_specs=o_spec,
        ),
        compiler_params=pltpu.CompilerParams(
            # Fully parallel elementwise grid; lets Mosaic shard across the two
            # TensorCores on v7x, neutral on v5e/v6e.
            dimension_semantics=("parallel", "parallel"),
        ),
        # TODO(synk): pass input_output_aliases={0: 0} when callers can donate X.
    )(x2, pos2)

    return out.reshape(B, L, D)


class LearnedPositionalEncoding:
    """JAX/Pallas port of the PyTorch LearnedPositionalEncoding module."""

    def __init__(self, embedding_dimension: int, sequence_length: int, key):
        # torch.nn.Embedding default init: weight ~ N(0, 1)
        self.weight = jax.random.normal(
            key, (sequence_length, embedding_dimension), dtype=jnp.float32
        )

    def __call__(self, X: jnp.ndarray, offset: int = 0) -> jnp.ndarray:
        L, D = X.shape[-2:]
        sequence_length = self.weight.shape[0]
        # NOTE: mirrors the PyTorch module exactly (including its `>=` check).
        if L + offset >= sequence_length:
            raise ValueError(
                f"Tried applying {type(self).__name__} with {sequence_length} "
                f"learned positions to longer sequence of length {L}. "
                f"(Tensor of shape {tuple(X.shape)})"
            )
        if offset < 0:
            raise ValueError(f"offset must be non-negative, got {offset}")
        lead = X.shape[:-2]
        B = 1
        for s in lead:
            B *= s
        x_flat = X.reshape((B, L, D))
        out = _learned_pos_encoding_pallas(
            x_flat, self.weight, jnp.asarray(offset, dtype=jnp.int32)
        )
        return out.reshape(X.shape)


if __name__ == "__main__":
    key = jax.random.PRNGKey(0)
    k_w, k_x, k_x2, k_x3 = jax.random.split(key, 4)

    # ---- case 1: small batch, D < 128 (lane-dense refactor, packed/squeezed path)
    D, S, B, L, offset = 32, 16, 2, 8, 3
    module = LearnedPositionalEncoding(embedding_dimension=D, sequence_length=S, key=k_w)
    X = jax.random.normal(k_x, (B, L, D), dtype=jnp.float32)
    out = jax.block_until_ready(module(X, offset=offset))
    ref = X + module.weight[offset:offset + L][None, :, :]
    assert out.shape == X.shape
    assert jnp.allclose(out, ref, atol=1e-6), "mismatch vs reference (case 1)"

    # Changing only the offset reuses the same compiled kernel (traced scalar).
    out2 = jax.block_until_ready(module(X, offset=5))
    ref2 = X + module.weight[5:5 + L][None, :, :]
    assert jnp.allclose(out2, ref2, atol=1e-6), "mismatch vs reference (offset=5)"

    # ---- case 2: B == 1, D % 128 == 0 (row-tiled path + >=2-step split for v7x)
    D2, S2, L2 = 128, 32, 16
    module2 = LearnedPositionalEncoding(embedding_dimension=D2, sequence_length=S2, key=k_w)
    X2 = jax.random.normal(k_x2, (1, L2, D2), dtype=jnp.float32)
    out3 = jax.block_until_ready(module2(X2, offset=7))
    ref3 = X2 + module2.weight[7:7 + L2][None, :, :]
    assert jnp.allclose(out3, ref3, atol=1e-6), "mismatch vs reference (case 2)"

    # ---- case 3: bf16 activations (dtype-aware tiling + in-wrapper pos cast)
    X3 = jax.random.normal(k_x3, (2, 8, 32), dtype=jnp.bfloat16)
    out4 = jax.block_until_ready(module(X3, offset=2))
    ref4 = X3 + module.weight[2:2 + 8][None, :, :].astype(jnp.bfloat16)
    assert jnp.allclose(out4.astype(jnp.float32), ref4.astype(jnp.float32), atol=1e-2), \
        "mismatch vs reference (bf16)"

    print("KERNEL_OK")
</pallas_src>

<mosaic_0001>
module attributes {stable_mosaic.version = 11 : i64} {
  func.func @_add_pos_kernel(%arg0: i32, %arg1: i32, %arg2: memref<1x2x128xf32, #tpu.memory_space<vmem>>, %arg3: memref<2x128xf32, #tpu.memory_space<vmem>>, %arg4: memref<1x2x128xf32, #tpu.memory_space<vmem>>) attributes {dimension_semantics = [#tpu.dimension_semantics<parallel>, #tpu.dimension_semantics<parallel>], iteration_bounds = array<i64: 1, 2>, scalar_prefetch = 0 : i64, scratch_operands = 0 : i64, tpu.core_type = #tpu.core_type<tc>, window_params = [{transform_indices = @transform_0, window_bounds = array<i64: 1, 2, 128>}, {transform_indices = @transform_1, window_bounds = array<i64: 2, 128>}, {transform_indices = @transform_2, window_bounds = array<i64: 1, 2, 128>}]} {
    %c0 = arith.constant 0 : index
    %c0_0 = arith.constant 0 : index
    %c0_1 = arith.constant 0 : index
    %0 = vector.load %arg2[%c0, %c0_0, %c0_1] : memref<1x2x128xf32, #tpu.memory_space<vmem>>, vector<1x2x128xf32>
    %1 = vector.shape_cast %0 : vector<1x2x128xf32> to vector<2x128xf32>
    %c0_2 = arith.constant 0 : index
    %c0_3 = arith.constant 0 : index
    %2 = vector.load %arg3[%c0_2, %c0_3] : memref<2x128xf32, #tpu.memory_space<vmem>>, vector<2x128xf32>
    %3 = arith.addf %1, %2 : vector<2x128xf32>
    %c0_4 = arith.constant 0 : index
    %c0_5 = arith.constant 0 : index
    %c0_6 = arith.constant 0 : index
    %4 = vector.load %arg4[%c0_4, %c0_5, %c0_6] : memref<1x2x128xf32, #tpu.memory_space<vmem>>, vector<1x2x128xf32>
    %5 = vector.shape_cast %4 : vector<1x2x128xf32> to vector<2x128xf32>
    %6 = vector.shape_cast %3 : vector<2x128xf32> to vector<1x2x128xf32>
    tpu.vector_store %arg4[%c0_4, %c0_5, %c0_6], %6 {strides = array<i32>} : memref<1x2x128xf32, #tpu.memory_space<vmem>>, vector<1x2x128xf32>,
    return
  }
  func.func @transform_0(%arg0: i32, %arg1: i32) -> (i32, i32, i32) {
    %c0_i32 = arith.constant 0 : i32
    %c0_i32_0 = arith.constant 0 : i32
    return %arg1, %arg0, %c0_i32 : i32, i32, i32
  }
  func.func @transform_1(%arg0: i32, %arg1: i32) -> (i32, i32) {
    %c0_i32 = arith.constant 0 : i32
    %c0_i32_0 = arith.constant 0 : i32
    return %arg0, %c0_i32 : i32, i32
  }
  func.func @transform_2(%arg0: i32, %arg1: i32) -> (i32, i32, i32) {
    %c0_i32 = arith.constant 0 : i32
    %c0_i32_0 = arith.constant 0 : i32
    return %arg1, %arg0, %c0_i32 : i32, i32, i32
  }
}

</mosaic_0001>

<bundles_post_ra>
// kernel: _learned_pos_encoding_pallas.1
= control target key start
LH: loop header
LB: loop body
LE: loop exit
PB: predicated region body
PF: predicated region fallthrough
CT: control target
= control target key end

     0   :  { %s354_s9 = smov 0   ;;  %s331_s10 = smov 0   ;;  %s368_s0 = inlined_call_operand.vmem [shape: f32[2,2,128], index: 0, kind: input, shape index: {}]   ;;  %s369_s1 = inlined_call_operand.vmem [shape: f32[2,128], index: 1, kind: input, shape index: {}]   ;;  %s370_s2 = inlined_call_operand.vmem [shape: f32[2,2,128], index: 2, kind: output, shape index: {}]  }
   0x1   :  { %s335_s11 = smov 0  }
   0x2 LB: > { %s21_s12 = sadd.s32 1, %s333_s10  ;;  %p286_p0 = scmp.ge.s32.totalorder %s337_s11, 1  ;;  %s337_s11 = sphi %s335_s11, %s12_s11   ;;  %s333_s10 = sphi %s331_s10, %s332_s10   ;;  %s329_s9 = sphi %s354_s9, %s371_s9  }
   0x3   : > { %p22_p1 = scmp.ge.s32.totalorder %s21_s12, 2  ;;  %p139_p2 = scmp.lt.s32.totalorder %s337_s11, 3 }
   0x5   : > { %s373_s12 = smov (%p22_p1, %s21_s12), 0  ;;  %p140_p3 = pnand %p286_p0, %p139_p2 }
   0x6   : > { %p169_p4 = scmp.lt.s32.totalorder (!%p140_p3), %s329_s9, 1 }
   0x7   : > { %143 = sbr.rel (%p140_p3) target bundleno = 19 (0x13), region = 28 }
   0xc   : > { %s375_s9 = smov (!%p169_p4, %s329_s9), 1  ;;  %v188_v0 = vld [vmem:[%s369_s1] sm:$0x3] }
   0xd   : > { %s287_s13 = sshll.u32 %s375_s9, 1 }
   0xe   : > { %s175_s18 = scalar_lea.vmem %s368_s0, %s287_s13  ;;  %s186_s21 = scalar_lea.vmem %s370_s2, %s287_s13 }
   0xf   : > { %v187_v1 = vld [vmem:[%s175_s18] sm:$0x3] }
  0x10   : > { %v189_v2 = vadd.f32 %v188_v0, %v187_v1 }
  0x12   : > { %190 = vst [vmem:[%s186_s21] sm:$0x3] %v189_v2 }
  0x13 PF: > { %s12_s11 = sadd.s32 1, %s337_s11   ;;  %s371_s9 = smov %s333_s10 }
  0x14   : > { %p9_p5 = scmp.ge.s32.totalorder %s12_s11, 4   ;;  %s332_s10 = smov %s373_s12  }
  0x16   :  { %11 = sbr.rel (!%p9_p5) target bundleno = 2 (0x2), region = 61 }

</bundles_post_ra>
